<compile_context>
chip_gen: v7x
topology: tpu7x:2x2x1
jax: 0.10.0
libtpu: 0.0.40
codegen_flags: <defaults>
</compile_context>

<pallas_src>
import functools

import jax
import jax.numpy as jnp
from jax import lax
from jax.experimental import pallas as pl
from jax.experimental.pallas import tpu as pltpu

LANE = 128


def _round_up(x, m):
    return ((x + m - 1) // m) * m


def _pad2d(a, rows, cols):
    r, c = a.shape
    if r == rows and c == cols:
        return a
    return jnp.pad(a, ((0, rows - r), (0, cols - c)))


def _vmem_budget_bytes():
    """Generation-aware scoped-VMEM budget (75% of per-core capacity)."""
    try:
        cap = int(pltpu.get_tpu_info().vmem_capacity_bytes)
    except Exception:
        cap = 64 << 20        # conservative fallback (v7x per-core VMEM)
    return int(cap * 3 // 4)


def _device_kind():
    try:
        return jax.devices()[0].device_kind.lower()
    except Exception:
        return ""


# ----------------------------------------------------------------------------
# Encoder kernel: 2 adjacency propagations + fused mu|logvar head + reparam
# ----------------------------------------------------------------------------
def vgae_encoder_kernel(adj_ref, x_ref, w1_ref, b1_ref, whead_ref, bhead_ref,
                        eps_ref, z_ref, mulv_ref):
    adj = adj_ref[...]                       # [Np, Np] bf16 normalized adjacency

    # conv1: relu(A_hat @ (x @ W1) + b1); bf16 operands, f32 accumulation
    xw = jnp.dot(x_ref[...], w1_ref[...], preferred_element_type=jnp.float32)
    h = jnp.dot(adj, xw.astype(jnp.bfloat16), preferred_element_type=jnp.float32)
    h = jnp.maximum(h + b1_ref[...], 0.0)    # [Np, HID_P] f32

    # shared propagation: A_hat @ (h @ W) == (A_hat @ h) @ W  (adj streamed once)
    ah = jnp.dot(adj, h.astype(jnp.bfloat16), preferred_element_type=jnp.float32)

    # fused head, lane-dense [Np, 256]: mu in lanes [0,128), logvar in [128,256)
    mulv = jnp.dot(ah.astype(jnp.bfloat16), whead_ref[...],
                   preferred_element_type=jnp.float32) + bhead_ref[...]
    mulv_ref[...] = mulv                     # unmasked 128-wide stores

    # reparameterize on the full 128-lane slab (padded lanes stay exactly zero)
    mu = mulv[:, :LANE]                      # 128-aligned slice: vreg-aligned
    logvar = mulv[:, LANE:]
    std = jnp.exp(0.5 * logvar)
    z = mu + eps_ref[...] * std              # [Np, 128] f32
    z_ref[...] = z.astype(z_ref.dtype)       # bf16 for the decoder MXU


# ----------------------------------------------------------------------------
# Decoder kernel: (i, j)-tiled recon[i, j] = sigmoid(z_i @ z_j.T)
# ----------------------------------------------------------------------------
def vgae_decoder_kernel(zi_ref, zj_ref, recon_ref):
    # contract last dims of both operands (trans-B semantics, no XLU transpose)
    logits = lax.dot_general(zi_ref[...], zj_ref[...],
                             (((1,), (1,)), ((), ())),
                             preferred_element_type=jnp.float32)
    # sigmoid(x) = 0.5*(tanh(0.5*x)+1): single EUP push per element
    recon_ref[...] = (0.5 * (jnp.tanh(0.5 * logits) + 1.0)).astype(recon_ref.dtype)
    # TODO(synk): exploit symmetry of z @ z.T (compute i <= j blocks and mirror).


# ----------------------------------------------------------------------------
# Wrapper
# ----------------------------------------------------------------------------
def vgae_forward(adj_norm, x_emb, params, eps, recon_dtype=None):
    """Fused VGAE forward.

    adj_norm: [N, N] f32 normalized adjacency D^{-1/2}(A+I)D^{-1/2}
    x_emb:    [N, in_dim] f32 embedded node features
    params:   dict with w1/b1/wmu/bmu/wlv/blv
    eps:      [N, out_dim] f32 standard-normal noise (training reparameterize)
    """
    N, in_dim = x_emb.shape
    hidden = params["w1"].shape[1]
    out_dim = params["wmu"].shape[1]
    assert out_dim <= LANE, "mu/logvar lane layout assumes out_dim <= 128"

    n_pad = _round_up(N, LANE)
    in_p = _round_up(in_dim, LANE)
    hid_p = _round_up(hidden, LANE)
    head_p = 2 * LANE

    if recon_dtype is None:
        # bf16 recon halves the dominant N^2 HBM writeback; most valuable on v5.
        recon_dtype = jnp.bfloat16 if "v5" in _device_kind() else jnp.float32

    # --- wrapper-side layout plumbing (all padding is zero-fill) ---------------
    adj_p = _pad2d(adj_norm, n_pad, n_pad).astype(jnp.bfloat16)
    x_p = _pad2d(x_emb, n_pad, in_p).astype(jnp.bfloat16)
    w1_p = _pad2d(params["w1"], in_p, hid_p).astype(jnp.bfloat16)
    b1_p = _pad2d(params["b1"], 1, hid_p).astype(jnp.float32)

    # mu -> lanes [0,128), logvar -> lanes [128,256)
    whead_p = jnp.zeros((hid_p, head_p), jnp.bfloat16)
    whead_p = whead_p.at[:hidden, :out_dim].set(params["wmu"].astype(jnp.bfloat16))
    whead_p = whead_p.at[:hidden, LANE:LANE + out_dim].set(
        params["wlv"].astype(jnp.bfloat16))
    bhead_p = jnp.zeros((1, head_p), jnp.float32)
    bhead_p = bhead_p.at[:, :out_dim].set(params["bmu"].astype(jnp.float32))
    bhead_p = bhead_p.at[:, LANE:LANE + out_dim].set(params["blv"].astype(jnp.float32))

    eps_p = _pad2d(eps.astype(jnp.float32), n_pad, LANE)

    # --- VMEM budget / single-block feasibility --------------------------------
    budget = _vmem_budget_bytes()
    enc_resident = (2 * n_pad * n_pad                       # adj bf16
                    + 2 * n_pad * in_p + 2 * in_p * hid_p   # x, w1 bf16
                    + 2 * hid_p * head_p                    # whead bf16
                    + 4 * n_pad * LANE                      # eps f32
                    + 4 * n_pad * hid_p * 3                 # xw/h/ah f32
                    + 4 * n_pad * head_p * 2                # mulv + temps f32
                    + 2 * n_pad * LANE)                     # z bf16
    assert enc_resident <= budget, (
        f"single-block encoder needs ~{enc_resident} B VMEM > budget {budget} B; "
        "row-blocked adjacency propagation not implemented yet")

    vmem = pl.BlockSpec(memory_space=pltpu.MemorySpace.VMEM)
    enc_flops = 2 * n_pad * (in_p * hid_p + 2 * n_pad * hid_p + hid_p * head_p)
    enc_in_bytes = sum(int(a.size) * a.dtype.itemsize
                       for a in (adj_p, x_p, w1_p, b1_p, whead_p, bhead_p, eps_p))
    enc_out_bytes = n_pad * LANE * 2 + n_pad * head_p * 4

    # --- encoder call (single block, everything in VMEM) -----------------------
    z_bf16, mulv = pl.pallas_call(
        vgae_encoder_kernel,
        out_shape=(jax.ShapeDtypeStruct((n_pad, LANE), jnp.bfloat16),
                   jax.ShapeDtypeStruct((n_pad, head_p), jnp.float32)),
        in_specs=[vmem] * 7,
        out_specs=(vmem, vmem),
        compiler_params=pltpu.CompilerParams(vmem_limit_bytes=budget),
        cost_estimate=pl.CostEstimate(flops=int(enc_flops),
                                      transcendentals=int(n_pad * LANE),
                                      bytes_accessed=int(enc_in_bytes + enc_out_bytes)),
    )(adj_p, x_p, w1_p, b1_p, whead_p, bhead_p, eps_p)

    # --- decoder call: lane-dense (i, j)-tiled grid -----------------------------
    tn = 256 if (n_pad % 256 == 0) else LANE    # 256-wide tiles fill v6e/v7x MXU
    grid = (n_pad // tn, n_pad // tn)
    dec_flops = 2 * n_pad * n_pad * LANE
    dec_bytes = (2 * grid[0] * n_pad * LANE * 2
                 + n_pad * n_pad * jnp.dtype(recon_dtype).itemsize)

    recon = pl.pallas_call(
        vgae_decoder_kernel,
        out_shape=jax.ShapeDtypeStruct((n_pad, n_pad), recon_dtype),
        grid_spec=pltpu.PrefetchScalarGridSpec(
            num_scalar_prefetch=0,
            grid=grid,
            in_specs=[pl.BlockSpec((tn, LANE), lambda i, j: (i, 0)),
                      pl.BlockSpec((tn, LANE), lambda i, j: (j, 0))],
            out_specs=pl.BlockSpec((tn, tn), lambda i, j: (i, j))),
        compiler_params=pltpu.CompilerParams(
            dimension_semantics=("parallel", "parallel"),
            vmem_limit_bytes=budget),
        cost_estimate=pl.CostEstimate(flops=int(dec_flops),
                                      transcendentals=int(n_pad * n_pad),
                                      bytes_accessed=int(dec_bytes)),
    )(z_bf16, z_bf16)

    mu = mulv[:N, :out_dim]
    logvar = mulv[:N, LANE:LANE + out_dim]
    return recon[:N, :N], mu, logvar


# ----------------------------------------------------------------------------
# Plain-JAX glue: embedding lookup + GCN normalized adjacency construction
# ----------------------------------------------------------------------------
def build_normalized_adj(edge_index, num_nodes):
    """Dense D^{-1/2}(A + I_remaining)D^{-1/2} matching torch_geometric gcn_norm.

    Duplicate edges are summed; self-loops are only added for nodes that do not
    already have one (add_remaining_self_loops semantics).
    """
    src, dst = edge_index[0], edge_index[1]
    adj = jnp.zeros((num_nodes, num_nodes), jnp.float32).at[dst, src].add(1.0)
    diag = jnp.diagonal(adj)
    adj = adj + jnp.diag(jnp.where(diag > 0.0, 0.0, 1.0))
    deg = jnp.sum(adj, axis=1)
    dinv = jnp.where(deg > 0, 1.0 / jnp.sqrt(deg), 0.0)
    return dinv[:, None] * adj * dinv[None, :]


def embed(emb_table, x_idx):
    # nn.Embedding(x).squeeze(): x_idx [N, 1] int -> [N, in_dim]
    return jnp.take(emb_table, x_idx[:, 0], axis=0)


def vgae_reference(adj_norm, x_emb, params, eps):
    """Pure-JAX f32 reference for correctness checking."""
    h = jnp.maximum(adj_norm @ (x_emb @ params["w1"]) + params["b1"], 0.0)
    mu = adj_norm @ (h @ params["wmu"]) + params["bmu"]
    logvar = adj_norm @ (h @ params["wlv"]) + params["blv"]
    z = mu + eps * jnp.exp(0.5 * logvar)
    return jax.nn.sigmoid(z @ z.T), mu, logvar


# ----------------------------------------------------------------------------
# Driver
# ----------------------------------------------------------------------------
if __name__ == "__main__":
    key = jax.random.PRNGKey(0)
    (k_emb, k_edges, k_idx, k_w1, k_wmu, k_wlv, k_eps) = jax.random.split(key, 7)

    # Small, module-consistent sizes
    N = 16            # number of graph nodes
    VOCAB = 32        # embedding vocabulary
    IN_DIM = 32
    HIDDEN_DIM = 32
    OUT_DIM = 16
    E = 24            # number of edges

    emb_table = jax.random.normal(k_emb, (VOCAB, IN_DIM), jnp.float32) * 0.1
    params = {
        "w1":  jax.random.normal(k_w1,  (IN_DIM, HIDDEN_DIM), jnp.float32)
               * (1.0 / jnp.sqrt(IN_DIM)),
        "b1":  jnp.zeros((1, HIDDEN_DIM), jnp.float32),
        "wmu": jax.random.normal(k_wmu, (HIDDEN_DIM, OUT_DIM), jnp.float32)
               * (1.0 / jnp.sqrt(HIDDEN_DIM)),
        "bmu": jnp.zeros((1, OUT_DIM), jnp.float32),
        "wlv": jax.random.normal(k_wlv, (HIDDEN_DIM, OUT_DIM), jnp.float32)
               * (1.0 / jnp.sqrt(HIDDEN_DIM)),
        "blv": jnp.zeros((1, OUT_DIM), jnp.float32),
    }

    # Inputs: integer node "features" (embedding indices) and an edge list
    x = jax.random.randint(k_idx, (N, 1), 0, VOCAB, jnp.int32)
    edge_index = jax.random.randint(k_edges, (2, E), 0, N, jnp.int32)

    # Training-mode reparameterization noise (randn_like)
    eps = jax.random.normal(k_eps, (N, OUT_DIM), jnp.float32)

    # Glue (embedding lookup + adjacency normalization), then the fused kernels
    x_emb = embed(emb_table, x)
    adj_norm = build_normalized_adj(edge_index, N)

    recon, mu, logvar = vgae_forward(adj_norm, x_emb, params, eps)
    jax.block_until_ready((recon, mu, logvar))

    # Shape / sanity / numerics checks against the pure-JAX reference
    assert recon.shape == (N, N)
    assert mu.shape == (N, OUT_DIM)
    assert logvar.shape == (N, OUT_DIM)
    assert bool(jnp.all(jnp.isfinite(recon)))

    recon_ref, mu_ref, logvar_ref = vgae_reference(adj_norm, x_emb, params, eps)
    assert float(jnp.max(jnp.abs(recon.astype(jnp.float32) - recon_ref))) < 5e-2
    assert float(jnp.max(jnp.abs(mu - mu_ref))) < 5e-2
    assert float(jnp.max(jnp.abs(logvar - logvar_ref))) < 5e-2

    print("KERNEL_OK")
</pallas_src>

<mosaic_0001>
module attributes {stable_mosaic.version = 11 : i64} {
  func.func @vgae_encoder_kernel(%arg0: memref<128x128xbf16, #tpu.memory_space<vmem>>, %arg1: memref<128x128xbf16, #tpu.memory_space<vmem>>, %arg2: memref<128x128xbf16, #tpu.memory_space<vmem>>, %arg3: memref<1x128xf32, #tpu.memory_space<vmem>>, %arg4: memref<128x256xbf16, #tpu.memory_space<vmem>>, %arg5: memref<1x256xf32, #tpu.memory_space<vmem>>, %arg6: memref<128x128xf32, #tpu.memory_space<vmem>>, %arg7: memref<128x128xbf16, #tpu.memory_space<vmem>>, %arg8: memref<128x256xf32, #tpu.memory_space<vmem>>) attributes {dimension_semantics = [], scalar_prefetch = 0 : i64, scratch_operands = 0 : i64, tpu.core_type = #tpu.core_type<tc>} {
    %c0 = arith.constant 0 : index
    %c0_0 = arith.constant 0 : index
    %0 = vector.load %arg0[%c0, %c0_0] : memref<128x128xbf16, #tpu.memory_space<vmem>>, vector<128x128xbf16>
    %c0_1 = arith.constant 0 : index
    %c0_2 = arith.constant 0 : index
    %1 = vector.load %arg1[%c0_1, %c0_2] : memref<128x128xbf16, #tpu.memory_space<vmem>>, vector<128x128xbf16>
    %c0_3 = arith.constant 0 : index
    %c0_4 = arith.constant 0 : index
    %2 = vector.load %arg2[%c0_3, %c0_4] : memref<128x128xbf16, #tpu.memory_space<vmem>>, vector<128x128xbf16>
    %cst = arith.constant dense<0.000000e+00> : vector<128x128xf32>
    %3 = tpu.matmul %1, %2, %cst {dimension_numbers = #tpu.dot_dimension_numbers<[1], [0], [0], [1], [0, 0, 1, 1], [], []>} : vector<128x128xbf16>, vector<128x128xbf16>, vector<128x128xf32> -> vector<128x128xf32>
    %4 = arith.truncf %3 : vector<128x128xf32> to vector<128x128xbf16>
    %cst_5 = arith.constant dense<0.000000e+00> : vector<128x128xf32>
    %5 = tpu.matmul %0, %4, %cst_5 {dimension_numbers = #tpu.dot_dimension_numbers<[1], [0], [0], [1], [0, 0, 1, 1], [], []>} : vector<128x128xbf16>, vector<128x128xbf16>, vector<128x128xf32> -> vector<128x128xf32>
    %c0_6 = arith.constant 0 : index
    %c0_7 = arith.constant 0 : index
    %6 = vector.load %arg3[%c0_6, %c0_7] : memref<1x128xf32, #tpu.memory_space<vmem>>, vector<1x128xf32>
    %7 = vector.broadcast %6 : vector<1x128xf32> to vector<128x128xf32>
    %8 = arith.addf %5, %7 : vector<128x128xf32>
    %cst_8 = arith.constant 0.000000e+00 : f32
    %9 = vector.broadcast %cst_8 : f32 to vector<128x128xf32>
    %10 = arith.maximumf %8, %9 : vector<128x128xf32>
    %11 = arith.truncf %10 : vector<128x128xf32> to vector<128x128xbf16>
    %cst_9 = arith.constant dense<0.000000e+00> : vector<128x128xf32>
    %12 = tpu.matmul %0, %11, %cst_9 {dimension_numbers = #tpu.dot_dimension_numbers<[1], [0], [0], [1], [0, 0, 1, 1], [], []>} : vector<128x128xbf16>, vector<128x128xbf16>, vector<128x128xf32> -> vector<128x128xf32>
    %13 = arith.truncf %12 : vector<128x128xf32> to vector<128x128xbf16>
    %c0_10 = arith.constant 0 : index
    %c0_11 = arith.constant 0 : index
    %14 = vector.load %arg4[%c0_10, %c0_11] : memref<128x256xbf16, #tpu.memory_space<vmem>>, vector<128x256xbf16>
    %cst_12 = arith.constant dense<0.000000e+00> : vector<128x256xf32>
    %15 = tpu.matmul %13, %14, %cst_12 {dimension_numbers = #tpu.dot_dimension_numbers<[1], [0], [0], [1], [0, 0, 1, 1], [], []>} : vector<128x128xbf16>, vector<128x256xbf16>, vector<128x256xf32> -> vector<128x256xf32>
    %c0_13 = arith.constant 0 : index
    %c0_14 = arith.constant 0 : index
    %16 = vector.load %arg5[%c0_13, %c0_14] : memref<1x256xf32, #tpu.memory_space<vmem>>, vector<1x256xf32>
    %17 = vector.broadcast %16 : vector<1x256xf32> to vector<128x256xf32>
    %18 = arith.addf %15, %17 : vector<128x256xf32>
    %c0_15 = arith.constant 0 : index
    %c0_16 = arith.constant 0 : index
    %19 = vector.load %arg8[%c0_15, %c0_16] : memref<128x256xf32, #tpu.memory_space<vmem>>, vector<128x256xf32>
    tpu.vector_store %arg8[%c0_15, %c0_16], %18 {strides = array<i32>} : memref<128x256xf32, #tpu.memory_space<vmem>>, vector<128x256xf32>,
    %20 = vector.extract_strided_slice %18 {offsets = [0, 0], sizes = [128, 128], strides = [1, 1]} : vector<128x256xf32> to vector<128x128xf32>
    %21 = vector.extract_strided_slice %18 {offsets = [0, 128], sizes = [128, 128], strides = [1, 1]} : vector<128x256xf32> to vector<128x128xf32>
    %cst_17 = arith.constant 5.000000e-01 : f32
    %22 = vector.broadcast %cst_17 : f32 to vector<128x128xf32>
    %23 = arith.mulf %22, %21 : vector<128x128xf32>
    %24 = math.exp %23 : vector<128x128xf32>
    %c0_18 = arith.constant 0 : index
    %c0_19 = arith.constant 0 : index
    %25 = vector.load %arg6[%c0_18, %c0_19] : memref<128x128xf32, #tpu.memory_space<vmem>>, vector<128x128xf32>
    %26 = arith.mulf %25, %24 : vector<128x128xf32>
    %27 = arith.addf %20, %26 : vector<128x128xf32>
    %28 = arith.truncf %27 : vector<128x128xf32> to vector<128x128xbf16>
    %c0_20 = arith.constant 0 : index
    %c0_21 = arith.constant 0 : index
    %29 = vector.load %arg7[%c0_20, %c0_21] : memref<128x128xbf16, #tpu.memory_space<vmem>>, vector<128x128xbf16>
    tpu.vector_store %arg7[%c0_20, %c0_21], %28 {strides = array<i32>} : memref<128x128xbf16, #tpu.memory_space<vmem>>, vector<128x128xbf16>,
    return
  }
}

</mosaic_0001>

<bundles_post_ra>
// kernel: tpu_custom_call.1
= control target key start
LH: loop header
LB: loop body
LE: loop exit
PB: predicated region body
PF: predicated region fallthrough
CT: control target
= control target key end

     0   :  { %14 = vsyncpa [#allocation3], 0  ;;  %s1995_s0 = inlined_call_operand.hbm [shape: bf16[128,128], index: 0, kind: input, shape index: {}]   ;;  %s1996_s1 = inlined_call_operand.hbm [shape: bf16[128,128], index: 1, kind: input, shape index: {}]   ;;  %s1997_s2 = inlined_call_operand.hbm [shape: bf16[128,128], index: 2, kind: input, shape index: {}]   ;;  %s1998_s3 = inlined_call_operand.vmem [shape: f32[1,128], index: 3, kind: input, shape index: {}]   ;;  %s1999_s4 = inlined_call_operand.hbm [shape: bf16[128,256], index: 4, kind: input, shape index: {}]   ;;  %s2000_s5 = inlined_call_operand.vmem [shape: f32[1,256], index: 5, kind: input, shape index: {}]   ;;  %s2001_s6 = inlined_call_operand.hbm [shape: f32[128,128], index: 6, kind: input, shape index: {}]   ;;  %s2002_s7 = inlined_call_operand.hbm [shape: bf16[128,128], index: 7, kind: output, shape index: {0}]   ;;  %s2003_s8 = inlined_call_operand.hbm [shape: f32[128,256], index: 8, kind: output, shape index: {1}]  }
   0x1   :  { %15 = vsyncpa [#allocation6], 0 }
   0x2   :  { %16 = vsyncpa [#allocation9], 0 }
   0x3   :  { %17 = vsyncpa [#allocation4], 0 }
   0x4   :  { %18 = vsyncpa [#allocation13], 0  ;;  %s1631_s27 = smov [#allocation5]   ;;  %s1632_s29 = smov [#allocation8]  }
   0x5   :  { %s36_s28 = sshll.u32 %s1631_s27, 4  ;;  %s62_s30 = sshll.u32 %s1632_s29, 4  ;;  %s37_s28 = int_to_ptr.vmem [resolvable:$true] %s36_s28  ;;  %s1690_s30 = int_to_ptr.vmem [resolvable:$true] %s62_s30 }
   0x6   :  { %s1467_s11 = scalar_lea.hbm %s1996_s1, 1024 }
   0x7   :  { %p1468_p0 = scmp.ne.s32.totalorder %s1996_s1, %s1467_s11  ;;  %p1471_p1 = scmp.lt.u32.totalorder %s1467_s11, %s1996_s1 }
   0x9   :  { %p1473_p2 = pnand %p1471_p1, %p1468_p0 }
   0xb   :  { %1476 = shalt.err (!%p1473_p2)
}
   0xc   :  { %s1477_s16 = scalar_lea.vmem %s37_s28, 1024  ;;  %p1482_p4 = scmp.lt.s32.totalorder %s37_s28, %s37_s28 }
   0xd   :  { %p1478_p3 = scmp.ne.s32.totalorder %s37_s28, %s1477_s16  ;;  %p1483_p5 = scmp.lt.s32.totalorder %s1477_s16, %s1477_s16 }
   0xf   :  { %p1484_p6 = por %p1483_p5, %p1482_p4 }
  0x11   :  { %p1485_p7 = pnand %p1484_p6, %p1478_p3 }
  0x13   :  { %1488 = shalt.err (!%p1485_p7)
}
  0x14   :  { %s1633_s17 = smov 64   ;;  %s1634_s18 = smov 4  }
  0x15   :  { %42 = dma.hbm_to_vmem [thread:$0]  %s1996_s1, 1024, %s37_s28, [#allocation6], %s1633_s17, %s1633_s17, %s1634_s18  }
  0x16   :  { %s1489_s23 = scalar_lea.hbm %s1999_s4, 2048 }
  0x17   :  { %p1490_p8 = scmp.ne.s32.totalorder %s1999_s4, %s1489_s23  ;;  %p1493_p9 = scmp.lt.u32.totalorder %s1489_s23, %s1999_s4 }
  0x19   :  { %p1495_p10 = pnand %p1493_p9, %p1490_p8 }
  0x1b   :  { %1498 = shalt.err (!%p1495_p10)
}
  0x1c   :  { %s1499_s29 = scalar_lea.vmem %s1690_s30, 2048  ;;  %p1504_p12 = scmp.lt.s32.totalorder %s1690_s30, %s1690_s30 }
  0x1d   :  { %p1500_p11 = scmp.ne.s32.totalorder %s1690_s30, %s1499_s29  ;;  %p1505_p13 = scmp.lt.s32.totalorder %s1499_s29, %s1499_s29 }
  0x1f   :  { %p1506_p0 = por %p1505_p13, %p1504_p12 }
  0x21   :  { %p1507_p1 = pnand %p1506_p0, %p1500_p11 }
  0x23   :  { %1510 = shalt.err (!%p1507_p1)
}
  0x24   :  { %s1635_s1 = smov 128   ;;  %s1636_s28 = smov 8  }
  0x25   :  { %68 = dma.hbm_to_vmem [thread:$0]  %s1999_s4, 2048, %s1690_s30, [#allocation9], %s1635_s1, %s1635_s1, %s1636_s28  }
  0x26   :  { %s1637_s11 = smov [#allocation2]   ;;  %s1638_s13 = smov [#allocation7]  }
  0x27   :  { %s24_s12 = sshll.u32 %s1637_s11, 4  ;;  %s48_s14 = sshll.u32 %s1638_s13, 4  ;;  %s25_s12 = int_to_ptr.vmem [resolvable:$true] %s24_s12  ;;  %s1727_s14 = int_to_ptr.vmem [resolvable:$true] %s48_s14 }
  0x28   :  { %s1511_s19 = scalar_lea.hbm %s1995_s0, 1024 }
  0x29   :  { %p1512_p2 = scmp.ne.s32.totalorder %s1995_s0, %s1511_s19  ;;  %p1515_p3 = scmp.lt.u32.totalorder %s1511_s19, %s1995_s0 }
  0x2b   :  { %p1517_p4 = pnand %p1515_p3, %p1512_p2 }
  0x2d   :  { %1520 = shalt.err (!%p1517_p4)
}
  0x2e   :  { %s1521_s4 = scalar_lea.vmem %s25_s12, 1024  ;;  %p1526_p6 = scmp.lt.s32.totalorder %s25_s12, %s25_s12 }
  0x2f   :  { %p1522_p5 = scmp.ne.s32.totalorder %s25_s12, %s1521_s4  ;;  %p1527_p7 = scmp.lt.s32.totalorder %s1521_s4, %s1521_s4 }
  0x31   :  { %p1528_p8 = por %p1527_p7, %p1526_p6 }
  0x33   :  { %p1529_p9 = pnand %p1528_p8, %p1522_p5 }
  0x35   :  { %1532 = shalt.err (!%p1529_p9)
}
  0x36   :  { %30 = dma.hbm_to_vmem [thread:$0]  %s1995_s0, 1024, %s25_s12, [#allocation3], %s1633_s17, %s1633_s17, %s1634_s18  }
  0x37   :  { %s1533_s27 = scalar_lea.hbm %s1997_s2, 1024 }
  0x38   :  { %p1534_p10 = scmp.ne.s32.totalorder %s1997_s2, %s1533_s27  ;;  %p1537_p11 = scmp.lt.u32.totalorder %s1533_s27, %s1997_s2 }
  0x3a   :  { %p1539_p12 = pnand %p1537_p11, %p1534_p10 }
  0x3c   :  { %1542 = shalt.err (!%p1539_p12)
}
  0x3d   :  { %s1543_s13 = scalar_lea.vmem %s1727_s14, 1024  ;;  %p1548_p0 = scmp.lt.s32.totalorder %s1727_s14, %s1727_s14 }
  0x3e   :  { %p1544_p13 = scmp.ne.s32.totalorder %s1727_s14, %s1543_s13  ;;  %p1549_p1 = scmp.lt.s32.totalorder %s1543_s13, %s1543_s13 }
  0x40   :  { %p1550_p2 = por %p1549_p1, %p1548_p0 }
  0x42   :  { %p1551_p3 = pnand %p1550_p2, %p1544_p13 }
  0x44   :  { %1554 = shalt.err (!%p1551_p3)
}
  0x45   :  { %54 = dma.hbm_to_vmem [thread:$0]  %s1997_s2, 1024, %s1727_s14, [#allocation6], %s1633_s17, %s1633_s17, %s1634_s18  }
  0x46   :  { %s1639_s15 = smov [#allocation10]   ;;  %s1555_s21 = scalar_lea.hbm %s2001_s6, 2048 }
  0x47   :  { %s76_s16 = sshll.u32 %s1639_s15, 4  ;;  %p1556_p4 = scmp.ne.s32.totalorder %s2001_s6, %s1555_s21  ;;  %s77_s16 = int_to_ptr.vmem [resolvable:$true] %s76_s16 }
  0x48   :  { %p1559_p5 = scmp.lt.u32.totalorder %s1555_s21, %s2001_s6 }
  0x4a   :  { %p1561_p6 = pnand %p1559_p5, %p1556_p4 }
  0x4c   :  { %1564 = shalt.err (!%p1561_p6)
}
  0x4d   :  { %s1565_s24 = scalar_lea.vmem %s77_s16, 2048  ;;  %p1570_p8 = scmp.lt.s32.totalorder %s77_s16, %s77_s16 }
  0x4e   :  { %p1566_p7 = scmp.ne.s32.totalorder %s77_s16, %s1565_s24  ;;  %p1571_p9 = scmp.lt.s32.totalorder %s1565_s24, %s1565_s24 }
  0x50   :  { %p1572_p10 = por %p1571_p9, %p1570_p8 }
  0x52   :  { %p1573_p11 = pnand %p1572_p10, %p1566_p7 }
  0x54   :  { %1576 = shalt.err (!%p1573_p11)
}
  0x55   :  { %82 = dma.hbm_to_vmem [thread:$0]  %s2001_s6, 2048, %s77_s16, [#allocation9], %s1635_s1, %s1635_s1, %s1636_s28  }
  0x56   :  { %1621 = dma.done.wait [#allocation3], 1024  }
  0x57   :  { %1622 = vsyncadd [#allocation3], 4294966272 }
  0x58   :  { %1623 = dma.done.wait [#allocation6], 2048  }
  0x59   :  { %1624 = vsyncadd [#allocation6], 4294965248 }
  0x5a   :  { %1625 = dma.done.wait [#allocation9], 4096  }
  0x5b   :  { %1626 = vsyncadd [#allocation9], 4294963200  ;;  %v1387_v0 = vld [vmem:[#allocation7] sm:$0xff]   ;;  %v1388_v1 = vld [vmem:[#allocation7 + $0x8] sm:$0xff]  }
  0x5c   :  { %1261 = vmatprep.subr.bf16.mxu0 %v1387_v0  ;;  %v1389_v2 = vld [vmem:[#allocation7 + $0x10] sm:$0xff]   ;;  %v1390_v3 = vld [vmem:[#allocation7 + $0x18] sm:$0xff]   ;;  %v1395_v4 = vld [vmem:[#allocation5] sm:$0xff]  }
  0x5d   :  { %1262 = vmatpush3.bf16.msra.mxu0 %v1387_v0  ;;  %1277 = vmatprep.mubr.bf16.mxu0 %v1395_v4  ;;  %v1391_v5 = vld [vmem:[#allocation7 + $0x20] sm:$0xff]   ;;  %v1392_v6 = vld [vmem:[#allocation7 + $0x28] sm:$0xff]   ;;  %v1393_v7 = vld [vmem:[#allocation7 + $0x30] sm:$0xff]  }
  0x5e   :  { %1263 = vmatprep.subr.bf16.mxu0 %v1388_v1  ;;  %v1394_v8 = vld [vmem:[#allocation7 + $0x38] sm:$0xff]   ;;  %v1396_v9 = vld [vmem:[#allocation5 + $0x8] sm:$0xff]   ;;  %v1397_v10 = vld [vmem:[#allocation5 + $0x10] sm:$0xff]  }
  0x5f   :  { %v1398_v11 = vld [vmem:[#allocation5 + $0x18] sm:$0xff]   ;;  %v1399_v12 = vld [vmem:[#allocation5 + $0x20] sm:$0xff]   ;;  %v1400_v13 = vld [vmem:[#allocation5 + $0x28] sm:$0xff]  }
  0x60   :  { %v1401_v14 = vld [vmem:[#allocation5 + $0x30] sm:$0xff]   ;;  %v1402_v15 = vld [vmem:[#allocation5 + $0x38] sm:$0xff]   ;;  %v1403_v16 = vld [vmem:[#allocation2] sm:$0xff]  }
  0x61   :  { %1264 = vmatpush3.bf16.msra.mxu0 %v1388_v1  ;;  %1309 = vmatprep.mubr.bf16.mxu1 %v1403_v16  ;;  %v1779_v41 = vld [vmem:[#allocation2 + $0x8] sm:$0xff]   ;;  %v1781_v42 = vld [vmem:[#allocation2 + $0x10] sm:$0xff]   ;;  %v1785_v43 = vld [vmem:[#allocation2 + $0x18] sm:$0xff]  }
  0x62   :  { %1265 = vmatprep.subr.bf16.mxu0 %v1389_v2  ;;  %v1787_v44 = vld [vmem:[#allocation2 + $0x20] sm:$0xff]   ;;  %v1791_v45 = vld [vmem:[#allocation2 + $0x28] sm:$0xff]   ;;  %v1793_v46 = vld [vmem:[#allocation2 + $0x30] sm:$0xff]  }
  0x63   :  { %v1797_v47 = vld [vmem:[#allocation2 + $0x38] sm:$0xff]   ;;  %v1800_v48 = vld [vmem:[#allocation8 + $0x4] ss:$8 sps:$4 sm:$0xff]   ;;  %v1802_v49 = vld [vmem:[#allocation8] ss:$8 sps:$4 sm:$0xff]  }
  0x64   :  { %v1804_v50 = vld [vmem:[#allocation8 + $0x14] ss:$8 sps:$4 sm:$0xff]   ;;  %v1809_v51 = vld [vmem:[#allocation8 + $0x10] ss:$8 sps:$4 sm:$0xff]   ;;  %v1811_v52 = vld [vmem:[#allocation8 + $0x24] ss:$8 sps:$4 sm:$0xff]  }
  0x65   :  { %1266 = vmatpush3.bf16.msra.mxu0 %v1389_v2  ;;  %v1815_v53 = vld [vmem:[#allocation8 + $0x20] ss:$8 sps:$4 sm:$0xff]   ;;  %v1817_v54 = vld [vmem:[#allocation8 + $0x34] ss:$8 sps:$4 sm:$0xff]   ;;  %v1821_v55 = vld [vmem:[#allocation8 + $0x30] ss:$8 sps:$4 sm:$0xff]  }
  0x66   :  { %1267 = vmatprep.subr.bf16.mxu0 %v1390_v3  ;;  %v1823_v56 = vld [vmem:[#allocation8 + $0x44] ss:$8 sps:$4 sm:$0xff]   ;;  %v1827_v57 = vld [vmem:[#allocation8 + $0x40] ss:$8 sps:$4 sm:$0xff]   ;;  %v1829_v58 = vld [vmem:[#allocation8 + $0x54] ss:$8 sps:$4 sm:$0xff]  }
  0x67   :  { %v1833_v59 = vld [vmem:[#allocation8 + $0x50] ss:$8 sps:$4 sm:$0xff]   ;;  %v1835_v60 = vld [vmem:[#allocation8 + $0x64] ss:$8 sps:$4 sm:$0xff]   ;;  %v1839_v61 = vld [vmem:[#allocation8 + $0x60] ss:$8 sps:$4 sm:$0xff]  }
  0x68   :  { %v1109_v62 = vld [vmem:[%s1998_s3] ss:$0 sm:$0xff] }
  0x69   :  { %1268 = vmatpush3.bf16.msra.mxu0 %v1390_v3 }
  0x6a   :  { %1269 = vmatprep.subr.bf16.mxu0 %v1391_v5 }
  0x6d   :  { %1270 = vmatpush3.bf16.msra.mxu0 %v1391_v5 }
  0x6e   :  { %1271 = vmatprep.subr.bf16.mxu0 %v1392_v6 }
  0x71   :  { %1272 = vmatpush3.bf16.msra.mxu0 %v1392_v6 }
  0x72   :  { %1273 = vmatprep.subr.bf16.mxu0 %v1393_v7 }
  0x75   :  { %1274 = vmatpush3.bf16.msra.mxu0 %v1393_v7 }
  0x76   :  { %1275 = vmatprep.subr.bf16.mxu0 %v1394_v8 }
  0x79   :  { %1276 = vmatpush3.bf16.msra.mxu0 %v1394_v8 }
  0x7c   :  { %1278 = vmatmul.mubr.bf16.vlgmr.msra.gmra.mrb[0].mxu0 %v1396_v9 }
  0x7d   :  { %1281 = vmatprep.mubr.bf16.mxu0 %v1397_v10 }
  0x84   :  { %1282 = vmatmul.mubr.bf16.gmra.mrb[4].mxu0 %v1398_v11 }
  0x85   :  { %1285 = vmatprep.mubr.bf16.mxu0 %v1399_v12 }
  0x8c   :  { %1286 = vmatmul.mubr.bf16.gmra.mrb[8].mxu0 %v1400_v13 }
  0x8d   :  { %1289 = vmatprep.mubr.bf16.mxu0 %v1401_v14 }
  0x94   :  { %1290 = vmatmul.mubr.bf16.gmra.mrb[12].mxu0 %v1402_v15 }
  0x95   :  { %1341 = vmatprep.mubr.bf16.mxu0 %v1403_v16 }
 0x14f   :  { %v1279_v17 = vpop.f32.mrb[0].mxu0 }
 0x150   :  { %v277_v18 = vpop.f32.mrb[1].mxu0 }
 0x151   :  { %v1280_v19 = vpop.f32.mrb[2].mxu0 }
 0x152   :  { %v341_v20 = vpack.c.bf16 %v1280_v19, %v1279_v17  ;;  %v280_v21 = vpop.f32.mrb[3].mxu0 }
 0x153   :  { %v340_v22 = vpack.c.bf16 %v280_v21, %v277_v18 }
 0x155   :  { %1293 = vmatprep.subr.bf16.mxu1 %v340_v22 }
 0x156   :  { %1294 = vmatpush3.bf16.msra.mxu1 %v340_v22 }
 0x157   :  { %v1283_v23 = vpop.f32.mrb[4].mxu0  ;;  %1295 = vmatprep.subr.bf16.mxu1 %v341_v20 }
 0x158   :  { %v293_v24 = vpop.f32.mrb[5].mxu0 }
 0x159   :  { %v1284_v25 = vpop.f32.mrb[6].mxu0 }
 0x15a   :  { %v343_v26 = vpack.c.bf16 %v1284_v25, %v1283_v23  ;;  %v296_v27 = vpop.f32.mrb[7].mxu0  ;;  %1296 = vmatpush3.bf16.msra.mxu1 %v341_v20 }
 0x15b   :  { %v342_v28 = vpack.c.bf16 %v296_v27, %v293_v24 }
 0x15d   :  { %1297 = vmatprep.subr.bf16.mxu1 %v342_v28 }
 0x15e   :  { %1298 = vmatpush3.bf16.msra.mxu1 %v342_v28 }
 0x15f   :  { %v1287_v29 = vpop.f32.mrb[8].mxu0  ;;  %1299 = vmatprep.subr.bf16.mxu1 %v343_v26 }
 0x160   :  { %v309_v30 = vpop.f32.mrb[9].mxu0 }
 0x161   :  { %v1288_v31 = vpop.f32.mrb[10].mxu0 }
 0x162   :  { %v345_v32 = vpack.c.bf16 %v1288_v31, %v1287_v29  ;;  %v312_v33 = vpop.f32.mrb[11].mxu0  ;;  %1300 = vmatpush3.bf16.msra.mxu1 %v343_v26 }
 0x163   :  { %v344_v34 = vpack.c.bf16 %v312_v33, %v309_v30 }
 0x165   :  { %1301 = vmatprep.subr.bf16.mxu1 %v344_v34 }
 0x166   :  { %1302 = vmatpush3.bf16.msra.mxu1 %v344_v34 }
 0x167   :  { %v1291_v35 = vpop.f32.mrb[12].mxu0  ;;  %1303 = vmatprep.subr.bf16.mxu1 %v345_v32 }
 0x168   :  { %v325_v36 = vpop.f32.mrb[13].mxu0 }
 0x169   :  { %v1292_v37 = vpop.f32.mrb[14].mxu0 }
 0x16a   :  { %v347_v38 = vpack.c.bf16 %v1292_v37, %v1291_v35  ;;  %v328_v39 = vpop.f32.mrb[15].mxu0  ;;  %1304 = vmatpush3.bf16.msra.mxu1 %v345_v32 }
 0x16b   :  { %v346_v40 = vpack.c.bf16 %v328_v39, %v325_v36 }
 0x16d   :  { %1305 = vmatprep.subr.bf16.mxu1 %v346_v40 }
 0x16e   :  { %1306 = vmatpush3.bf16.msra.mxu1 %v346_v40 }
 0x16f   :  { %1307 = vmatprep.subr.bf16.mxu1 %v347_v38 }
 0x172   :  { %1308 = vmatpush3.bf16.msra.mxu1 %v347_v38 }
 0x173   :  { %1357 = vmatprep.subr.bf16.mxu1 %v1800_v48 }
 0x175   :  { %1310 = vmatmul.mubr.bf16.vlgmr.msra.gmra.mrb[0].mxu1 %v1779_v41 }
 0x176   :  { %1313 = vmatprep.mubr.bf16.mxu1 %v1781_v42  ;;  %1365 = vmatpush1.bf16.msra.mxu1 %v1802_v49 }
 0x177   :  { %1358 = vmatprep.subr.bf16.mxu1 %v1804_v50 }
 0x17a   :  { %1366 = vmatpush1.bf16.msra.mxu1 %v1809_v51 }
 0x17b   :  { %1359 = vmatprep.subr.bf16.mxu1 %v1811_v52 }
 0x17d   :  { %1314 = vmatmul.mubr.bf16.gmra.mrb[4].mxu1 %v1785_v43 }
 0x17e   :  { %1317 = vmatprep.mubr.bf16.mxu1 %v1787_v44  ;;  %1367 = vmatpush1.bf16.msra.mxu1 %v1815_v53 }
 0x17f   :  { %1360 = vmatprep.subr.bf16.mxu1 %v1817_v54 }
 0x182   :  { %1368 = vmatpush1.bf16.msra.mxu1 %v1821_v55 }
 0x183   :  { %1361 = vmatprep.subr.bf16.mxu1 %v1823_v56 }
 0x185   :  { %1318 = vmatmul.mubr.bf16.gmra.mrb[8].mxu1 %v1791_v45 }
 0x186   :  { %1321 = vmatprep.mubr.bf16.mxu1 %v1793_v46  ;;  %1369 = vmatpush1.bf16.msra.mxu1 %v1827_v57 }
 0x187   :  { %1362 = vmatprep.subr.bf16.mxu1 %v1829_v58 }
 0x18a   :  { %1370 = vmatpush1.bf16.msra.mxu1 %v1833_v59 }
 0x18b   :  { %1363 = vmatprep.subr.bf16.mxu1 %v1835_v60 }
 0x18d   :  { %1322 = vmatmul.mubr.bf16.gmra.mrb[12].mxu1 %v1797_v47 }
 0x18e   :  { %1371 = vmatpush1.bf16.msra.mxu1 %v1839_v61 }
 0x248   :  { %v1311_v63 = vpop.f32.mrb[0].mxu1 }
 0x249   :  { %v446_v0 = vadd.f32 %v1311_v63, %v1109_v62  ;;  %v437_v1 = vpop.f32.mrb[1].mxu1 }
 0x24a   :  { %v438_v2 = vadd.f32 %v1109_v62, %v437_v1  ;;  %v1312_v3 = vpop.f32.mrb[2].mxu1 }
 0x24b   :  { %v449_v4 = vadd.f32 %v1312_v3, %v1109_v62  ;;  %v440_v5 = vpop.f32.mrb[3].mxu1  ;;  %v502_v7 = vmax.f32 %v446_v0, 0.0 }
 0x24c   :  { %v441_v6 = vadd.f32 %v1109_v62, %v440_v5  ;;  %v500_v9 = vmax.f32 %v438_v2, 0.0 }
 0x24d   :  { %v503_v8 = vmax.f32 %v449_v4, 0.0 }
 0x24e   :  { %v501_v10 = vmax.f32 %v441_v6, 0.0 }
 0x24f   :  { %v517_v11 = vpack.c.bf16 %v503_v8, %v502_v7 }
 0x250   :  { %v516_v12 = vpack.c.bf16 %v501_v10, %v500_v9  ;;  %v1315_v13 = vpop.f32.mrb[4].mxu1 }
 0x251   :  { %v462_v14 = vadd.f32 %v1315_v13, %v1109_v62  ;;  %v453_v15 = vpop.f32.mrb[5].mxu1 }
 0x252   :  { %v454_v16 = vadd.f32 %v1109_v62, %v453_v15  ;;  %v1316_v17 = vpop.f32.mrb[6].mxu1  ;;  %1325 = vmatprep.subr.bf16.mxu0 %v516_v12 }
 0x253   :  { %v465_v18 = vadd.f32 %v1316_v17, %v1109_v62  ;;  %v456_v19 = vpop.f32.mrb[7].mxu1  ;;  %1326 = vmatpush3.bf16.msra.mxu0 %v516_v12  ;;  %v506_v21 = vmax.f32 %v462_v14, 0.0 }
 0x254   :  { %v457_v20 = vadd.f32 %v1109_v62, %v456_v19  ;;  %1327 = vmatprep.subr.bf16.mxu0 %v517_v11  ;;  %v504_v23 = vmax.f32 %v454_v16, 0.0 }
 0x255   :  { %v507_v22 = vmax.f32 %v465_v18, 0.0  ;;  %v647_v18 = vlaneseq }
 0x256   :  { %v505_v24 = vmax.f32 %v457_v20, 0.0 }
 0x257   :  { %v519_v25 = vpack.c.bf16 %v507_v22, %v506_v21  ;;  %1328 = vmatpush3.bf16.msra.mxu0 %v517_v11  ;;  %v648_v19 = vshrl.u32 %v647_v18, 7  ;;  %v645_v21 = vld [vmem:[%s2000_s5] sm:$0x3]  ;;  %s1641_s5 = smov [#allocation12]  }
 0x258   :  { %v518_v26 = vpack.c.bf16 %v505_v24, %v504_v23  ;;  %v1319_v27 = vpop.f32.mrb[8].mxu1  ;;  %s1075_s25 = sshll.u32 %s1641_s5, 4  ;;  %s1956_s25 = int_to_ptr.vmem [resolvable:$true] %s1075_s25 }
 0x259   :  { %v478_v28 = vadd.f32 %v1319_v27, %v1109_v62  ;;  %v469_v29 = vpop.f32.mrb[9].mxu1  ;;  %v649_v20 = vsub.s32 0, %v648_v19  ;;  %v653_v22 = vsub.s32 1, %v648_v19  ;;  %s1577_s26 = scalar_lea.vmem %s1956_s25, 4096  ;;  %p1582_p13 = scmp.lt.s32.totalorder %s1956_s25, %s1956_s25 }
 0x25a   :  { %v470_v30 = vadd.f32 %v1109_v62, %v469_v29  ;;  %v1320_v31 = vpop.f32.mrb[10].mxu1  ;;  %1329 = vmatprep.subr.bf16.mxu0 %v518_v26  ;;  %p1578_p12 = scmp.ne.s32.totalorder %s1956_s25, %s1577_s26  ;;  %p1583_p0 = scmp.lt.s32.totalorder %s1577_s26, %s1577_s26 }
 0x25b   :  { %v481_v32 = vadd.f32 %v1320_v31, %v1109_v62  ;;  %v472_v33 = vpop.f32.mrb[11].mxu1  ;;  %1330 = vmatpush3.bf16.msra.mxu0 %v518_v26  ;;  %v510_v35 = vmax.f32 %v478_v28, 0.0  ;;  %v1869_v23 = vrot.slane %v645_v21, %v649_v20  ;;  %v1871_v24 = vrot.slane %v645_v21, %v653_v22  ;;  %v934_v20 = vld [vmem:[#allocation10 + $0x20] sm:$0xff] }
 0x25c   :  { %v473_v34 = vadd.f32 %v1109_v62, %v472_v33  ;;  %1331 = vmatprep.subr.bf16.mxu0 %v519_v25  ;;  %v508_v37 = vmax.f32 %v470_v30, 0.0  ;;  %p1584_p1 = por %p1583_p0, %p1582_p13 }
 0x25d   :  { %v511_v36 = vmax.f32 %v481_v32, 0.0 }
 0x25e   :  { %v509_v38 = vmax.f32 %v473_v34, 0.0  ;;  %p1585_p2 = pnand %p1584_p1, %p1578_p12 }
 0x25f   :  { %v521_v39 = vpack.c.bf16 %v511_v36, %v510_v35  ;;  %1332 = vmatpush3.bf16.msra.mxu0 %v519_v25 }
 0x260   :  { %v520_v40 = vpack.c.bf16 %v509_v38, %v508_v37  ;;  %v1323_v63 = vpop.f32.mrb[12].mxu1 }
 0x261   :  { %v494_v0 = vadd.f32 %v1323_v63, %v1109_v62  ;;  %v485_v1 = vpop.f32.mrb[13].mxu1 }
 0x262   :  { %v486_v2 = vadd.f32 %v1109_v62, %v485_v1  ;;  %v1324_v3 = vpop.f32.mrb[14].mxu1  ;;  %1333 = vmatprep.subr.bf16.mxu0 %v520_v40 }
 0x263   :  { %v497_v4 = vadd.f32 %v1324_v3, %v1109_v62  ;;  %v488_v5 = vpop.f32.mrb[15].mxu1  ;;  %1334 = vmatpush3.bf16.msra.mxu0 %v520_v40  ;;  %v514_v7 = vmax.f32 %v494_v0, 0.0 }
 0x264   :  { %v489_v6 = vadd.f32 %v1109_v62, %v488_v5  ;;  %1335 = vmatprep.subr.bf16.mxu0 %v521_v39  ;;  %v512_v9 = vmax.f32 %v486_v2, 0.0 }
 0x265   :  { %v515_v8 = vmax.f32 %v497_v4, 0.0 }
 0x266   :  { %v513_v10 = vmax.f32 %v489_v6, 0.0 }
 0x267   :  { %v523_v11 = vpack.c.bf16 %v515_v8, %v514_v7  ;;  %1336 = vmatpush3.bf16.msra.mxu0 %v521_v39 }
 0x268   :  { %v522_v12 = vpack.c.bf16 %v513_v10, %v512_v9 }
 0x26a   :  { %1337 = vmatprep.subr.bf16.mxu0 %v522_v12 }
 0x26b   :  { %1338 = vmatpush3.bf16.msra.mxu0 %v522_v12 }
 0x26c   :  { %1339 = vmatprep.subr.bf16.mxu0 %v523_v11 }
 0x26f   :  { %1340 = vmatpush3.bf16.msra.mxu0 %v523_v11 }
 0x270   :  { %737 = vmatprep.subr.bf16.mxu0 %v1800_v48 }
 0x272   :  { %1342 = vmatmul.mubr.bf16.vlgmr.msra.gmra.mrb[16].mxu0 %v1779_v41  ;;  %v1434_v41 = vld [vmem:[#allocation8 + $0x74] ss:$8 sps:$4 sm:$0xff]  }
 0x273   :  { %1345 = vmatprep.mubr.bf16.mxu0 %v1781_v42  ;;  %738 = vmatpush1.bf16.msra.mxu0 %v1802_v49  ;;  %v1432_v42 = vld [vmem:[#allocation8 + $0x70] ss:$8 sps:$4 sm:$0xff]  }
 0x274   :  { %739 = vmatprep.subr.bf16.mxu0 %v1804_v50  ;;  %1364 = vmatprep.subr.bf16.mxu1 %v1434_v41 }
 0x275   :  { %1372 = vmatpush1.bf16.msra.mxu1 %v1432_v42 }
 0x277   :  { %740 = vmatpush1.bf16.msra.mxu0 %v1809_v51 }
 0x278   :  { %741 = vmatprep.subr.bf16.mxu0 %v1811_v52 }
 0x27a   :  { %1346 = vmatmul.mubr.bf16.gmra.mrb[20].mxu0 %v1785_v43  ;;  %v1640_v43 = vmov 0  }
 0x27b   :  { %1349 = vmatprep.mubr.bf16.mxu0 %v1787_v44  ;;  %742 = vmatpush1.bf16.msra.mxu0 %v1815_v53 }
 0x27c   :  { %743 = vmatprep.subr.bf16.mxu0 %v1817_v54  ;;  %789 = vmatprep.mubr.bf16.mxu1 %v1640_v43 }
 0x27f   :  { %744 = vmatpush1.bf16.msra.mxu0 %v1821_v55 }
 0x280   :  { %745 = vmatprep.subr.bf16.mxu0 %v1823_v56 }
 0x282   :  { %1350 = vmatmul.mubr.bf16.gmra.mrb[24].mxu0 %v1791_v45 }
 0x283   :  { %1353 = vmatprep.mubr.bf16.mxu0 %v1793_v46  ;;  %746 = vmatpush1.bf16.msra.mxu0 %v1827_v57 }
 0x284   :  { %747 = vmatprep.subr.bf16.mxu0 %v1829_v58 }
 0x287   :  { %748 = vmatpush1.bf16.msra.mxu0 %v1833_v59 }
 0x288   :  { %749 = vmatprep.subr.bf16.mxu0 %v1835_v60 }
 0x28a   :  { %1354 = vmatmul.mubr.bf16.gmra.mrb[28].mxu0 %v1797_v47 }
 0x28b   :  { %750 = vmatpush1.bf16.msra.mxu0 %v1839_v61  ;;  %769 = vmatprep.mubr.bf16.mxu0 %v1640_v43 }
 0x28c   :  { %751 = vmatprep.subr.bf16.mxu0 %v1434_v41 }
 0x28f   :  { %752 = vmatpush1.bf16.msra.mxu0 %v1432_v42 }
 0x345   :  { %v1343_v44 = vpop.f32.mrb[16].mxu0 }
 0x346   :  { %v558_v45 = vpop.f32.mrb[17].mxu0 }
 0x347   :  { %v1344_v46 = vpop.f32.mrb[18].mxu0 }
 0x348   :  { %v622_v48 = vpack.c.bf16 %v1344_v46, %v1343_v44  ;;  %v561_v49 = vpop.f32.mrb[19].mxu0 }
 0x349   :  { %v621_v50 = vpack.c.bf16 %v561_v49, %v558_v45  ;;  %v930_v45 = vld [vmem:[#allocation10] sm:$0xff] }
 0x34b   :  { %770 = vmatmul.mubr.bf16.vlgmr.msra.gmra.mrb[32].mxu0 %v621_v50 }
 0x34c   :  { %779 = vmatprep.mubr.bf16.mxu0 %v1640_v43 }
 0x34d   :  { %v1347_v47 = vpop.f32.mrb[20].mxu0 }
 0x34e   :  { %v574_v51 = vpop.f32.mrb[21].mxu0 }
 0x34f   :  { %v1348_v52 = vpop.f32.mrb[22].mxu0 }
 0x350   :  { %v624_v53 = vpack.c.bf16 %v1348_v52, %v1347_v47  ;;  %v577_v54 = vpop.f32.mrb[23].mxu0  ;;  %v931_v52 = vld [vmem:[#allocation10 + $0x8] sm:$0xff] }
 0x351   :  { %v623_v55 = vpack.c.bf16 %v577_v54, %v574_v51 }
 0x353   :  { %780 = vmatmul.mubr.bf16.gmra.mrb[36].mxu0 %v622_v48  ;;  %790 = vmatmul.mubr.bf16.vlgmr.msra.gmra.mrb[16].mxu1 %v623_v55 }
 0x354   :  { %799 = vmatprep.mubr.bf16.mxu1 %v1640_v43 }
 0x355   :  { %v1351_v56 = vpop.f32.mrb[24].mxu0 }
 0x356   :  { %v590_v57 = vpop.f32.mrb[25].mxu0 }
 0x357   :  { %v1352_v58 = vpop.f32.mrb[26].mxu0 }
 0x358   :  { %v626_v59 = vpack.c.bf16 %v1352_v58, %v1351_v56  ;;  %v593_v60 = vpop.f32.mrb[27].mxu0 }
 0x359   :  { %v625_v61 = vpack.c.bf16 %v593_v60, %v590_v57 }
 0x35b   :  { %800 = vmatmul.mubr.bf16.gmra.mrb[20].mxu1 %v624_v53 }
 0x35c   :  { %809 = vmatprep.mubr.bf16.mxu1 %v1640_v43 }
 0x35d   :  { %v1355_v62 = vpop.f32.mrb[28].mxu0 }
 0x35e   :  { %v606_v13 = vpop.f32.mrb[29].mxu0 }
 0x35f   :  { %v1356_v14 = vpop.f32.mrb[30].mxu0 }
 0x360   :  { %v628_v15 = vpack.c.bf16 %v1356_v14, %v1355_v62  ;;  %v609_v16 = vpop.f32.mrb[31].mxu0 }
 0x361   :  { %v627_v17 = vpack.c.bf16 %v609_v16, %v606_v13  ;;  %v932_v16 = vld [vmem:[#allocation10 + $0x10] sm:$0xff] }
 0x363   :  { %810 = vmatmul.mubr.bf16.gmra.mrb[24].mxu1 %v625_v61 }
 0x364   :  { %819 = vmatprep.mubr.bf16.mxu1 %v1640_v43 }
 0x36b   :  { %820 = vmatmul.mubr.bf16.gmra.mrb[28].mxu1 %v626_v59 }
 0x36c   :  { %829 = vmatprep.mubr.bf16.mxu1 %v1640_v43 }
 0x373   :  { %830 = vmatmul.mubr.bf16.gmra.mrb[32].mxu1 %v627_v17 }
 0x374   :  { %839 = vmatprep.mubr.bf16.mxu1 %v1640_v43 }
 0x37b   :  { %840 = vmatmul.mubr.bf16.gmra.mrb[36].mxu1 %v628_v15 }
 0x41e   :  { %v771_v25 = vpop.f32.mrb[32].mxu0 }
 0x41f   :  { %v1874_v26 = vadd.f32 %v771_v25, %v1869_v23  ;;  %v773_v27 = vpop.f32.mrb[33].mxu0 }
 0x420   :  { %v774_v28 = vadd.f32 %v773_v27, %v1871_v24  ;;  %v775_v29 = vpop.f32.mrb[34].mxu0 }
 0x421   :  { %850 = vst [vmem:[#allocation12] sm:$0xff] %v1874_v26  ;;  %v1879_v30 = vadd.f32 %v775_v29, %v1869_v23  ;;  %v777_v31 = vpop.f32.mrb[35].mxu0 }
 0x422   :  { %851 = vst [vmem:[#allocation12 + $0x8] sm:$0xff] %v774_v28  ;;  %v882_v32 = vmul.f32 0.5, %v774_v28  ;;  %v778_v33 = vadd.f32 %v777_v31, %v1871_v24 }
 0x423   :  { %852 = vst [vmem:[#allocation12 + $0x10] sm:$0xff] %v1879_v30 }
 0x424   :  { %v898_v34 = vmul.f32 1.442695, %v882_v32  ;;  %853 = vst [vmem:[#allocation12 + $0x18] sm:$0xff] %v778_v33  ;;  %v883_v35 = vmul.f32 0.5, %v778_v33 }
 0x426   :  { %1435 = vpow2.f32 %v898_v34  ;;  %v900_v36 = vmul.f32 1.442695, %v883_v35  ;;  %v781_v37 = vpop.f32.mrb[36].mxu0  ;;  %v791_v38 = vpop.f32.mrb[16].mxu1 }
 0x427   :  { %v1884_v39 = vadd.f32 %v781_v37, %v1869_v23  ;;  %v1887_v40 = vadd.f32 %v791_v38, %v1869_v23  ;;  %v783_v63 = vpop.f32.mrb[37].mxu0  ;;  %v793_v0 = vpop.f32.mrb[17].mxu1 }
 0x428   :  { %1437 = vpow2.f32 %v900_v36  ;;  %v784_v1 = vadd.f32 %v783_v63, %v1871_v24  ;;  %v794_v2 = vadd.f32 %v793_v0, %v1871_v24  ;;  %v785_v3 = vpop.f32.mrb[38].mxu0  ;;  %v795_v4 = vpop.f32.mrb[18].mxu1 }
 0x429   :  { %854 = vst [vmem:[#allocation12 + $0x20] sm:$0xff] %v1884_v39  ;;  %858 = vst [vmem:[#allocation12 + $0x40] sm:$0xff] %v1887_v40  ;;  %v1894_v5 = vadd.f32 %v785_v3, %v1869_v23  ;;  %v1897_v6 = vadd.f32 %v795_v4, %v1869_v23  ;;  %v787_v7 = vpop.f32.mrb[39].mxu0  ;;  %v797_v8 = vpop.f32.mrb[19].mxu1 }
 0x42a   :  { %855 = vst [vmem:[#allocation12 + $0x28] sm:$0xff] %v784_v1  ;;  %v884_v9 = vmul.f32 0.5, %v784_v1  ;;  %859 = vst [vmem:[#allocation12 + $0x48] sm:$0xff] %v794_v2  ;;  %v886_v10 = vmul.f32 0.5, %v794_v2  ;;  %v788_v11 = vadd.f32 %v787_v7, %v1871_v24  ;;  %v798_v12 = vadd.f32 %v797_v8, %v1871_v24 }
 0x42b   :  { %856 = vst [vmem:[#allocation12 + $0x30] sm:$0xff] %v1894_v5  ;;  %860 = vst [vmem:[#allocation12 + $0x50] sm:$0xff] %v1897_v6 }
 0x42c   :  { %v902_v41 = vmul.f32 1.442695, %v884_v9  ;;  %v906_v42 = vmul.f32 1.442695, %v886_v10  ;;  %857 = vst [vmem:[#allocation12 + $0x38] sm:$0xff] %v788_v11  ;;  %v885_v43 = vmul.f32 0.5, %v788_v11 }
 0x42d   :  { %861 = vst [vmem:[#allocation12 + $0x58] sm:$0xff] %v798_v12  ;;  %v887_v44 = vmul.f32 0.5, %v798_v12  ;;  %v936_v9 = vld [vmem:[#allocation10 + $0x30] sm:$0xff] }
 0x42e   :  { %1439 = vpow2.f32 %v902_v41  ;;  %v904_v46 = vmul.f32 1.442695, %v885_v43  ;;  %v801_v49 = vpop.f32.mrb[20].mxu1 }
 0x42f   :  { %v908_v48 = vmul.f32 1.442695, %v887_v44  ;;  %1441 = vpow2.f32 %v906_v42  ;;  %v1904_v50 = vadd.f32 %v801_v49, %v1869_v23  ;;  %v803_v47 = vpop.f32.mrb[21].mxu1 }
 0x430   :  { %v1436_v51 = vpop.eup %1435  ;;  %1443 = vpow2.f32 %v904_v46  ;;  %v804_v53 = vadd.f32 %v803_v47, %v1871_v24  ;;  %v805_v54 = vpop.f32.mrb[22].mxu1 }
 0x431   :  { %v946_v55 = vmul.f32 %v1436_v51, %v930_v45  ;;  %1445 = vpow2.f32 %v908_v48  ;;  %862 = vst [vmem:[#allocation12 + $0x60] sm:$0xff] %v1904_v50  ;;  %v1909_v56 = vadd.f32 %v805_v54, %v1869_v23  ;;  %v807_v57 = vpop.f32.mrb[23].mxu1 }
 0x432   :  { %v1438_v58 = vpop.eup %1437  ;;  %863 = vst [vmem:[#allocation12 + $0x68] sm:$0xff] %v804_v53  ;;  %v888_v59 = vmul.f32 0.5, %v804_v53  ;;  %v808_v60 = vadd.f32 %v807_v57, %v1871_v24  ;;  %v938_v57 = vld [vmem:[#allocation10 + $0x40] sm:$0xff] }
 0x433   :  { %v962_v61 = vadd.f32 %v946_v55, %v1874_v26  ;;  %v947_v62 = vmul.f32 %v1438_v58, %v931_v52  ;;  %864 = vst [vmem:[#allocation12 + $0x70] sm:$0xff] %v1909_v56  ;;  %v933_v26 = vld [vmem:[#allocation10 + $0x18] sm:$0xff] }
 0x434   :  { %v910_v13 = vmul.f32 1.442695, %v888_v59  ;;  %865 = vst [vmem:[#allocation12 + $0x78] sm:$0xff] %v808_v60  ;;  %v889_v14 = vmul.f32 0.5, %v808_v60 }
 0x435   :  { %v963_v15 = vadd.f32 %v947_v62, %v1879_v30  ;;  %v935_v30 = vld [vmem:[#allocation10 + $0x28] sm:$0xff] }
 0x436   :  { %1447 = vpow2.f32 %v910_v13  ;;  %v912_v17 = vmul.f32 1.442695, %v889_v14  ;;  %v811_v18 = vpop.f32.mrb[24].mxu1  ;;  %v939_v14 = vld [vmem:[#allocation10 + $0x48] sm:$0xff] }
 0x437   :  { %v1169_v19 = vpack.c.bf16 %v963_v15, %v962_v61  ;;  %v1916_v21 = vadd.f32 %v811_v18, %v1869_v23  ;;  %v813_v22 = vpop.f32.mrb[25].mxu1 }
 0x438   :  { %v1440_v25 = vpop.eup %1439  ;;  %1449 = vpow2.f32 %v912_v17  ;;  %v814_v27 = vadd.f32 %v813_v22, %v1871_v24  ;;  %v815_v28 = vpop.f32.mrb[26].mxu1 }
 0x439   :  { %v1442_v29 = vpop.eup %1441  ;;  %1170 = vst [vmem:[#allocation11] sm:$0xff] %v1169_v19   ;;  %v948_v31 = vmul.f32 %v1440_v25, %v932_v16  ;;  %866 = vst [vmem:[#allocation12 + $0x80] sm:$0xff] %v1916_v21  ;;  %v1921_v32 = vadd.f32 %v815_v28, %v1869_v23  ;;  %v817_v33 = vpop.f32.mrb[27].mxu1 }
 0x43a   :  { %v1444_v34 = vpop.eup %1443  ;;  %v950_v35 = vmul.f32 %v1442_v29, %v934_v20  ;;  %867 = vst [vmem:[#allocation12 + $0x88] sm:$0xff] %v814_v27  ;;  %v890_v36 = vmul.f32 0.5, %v814_v27  ;;  %v818_v37 = vadd.f32 %v817_v33, %v1871_v24  ;;  %v940_v29 = vld [vmem:[#allocation10 + $0x50] sm:$0xff] }
 0x43b   :  { %v1446_v38 = vpop.eup %1445  ;;  %v964_v63 = vadd.f32 %v948_v31, %v1884_v39  ;;  %v949_v0 = vmul.f32 %v1444_v34, %v933_v26  ;;  %868 = vst [vmem:[#allocation12 + $0x90] sm:$0xff] %v1921_v32 }
 0x43c   :  { %v966_v1 = vadd.f32 %v950_v35, %v1887_v40  ;;  %v951_v2 = vmul.f32 %v1446_v38, %v935_v30  ;;  %v914_v3 = vmul.f32 1.442695, %v890_v36  ;;  %869 = vst [vmem:[#allocation12 + $0x98] sm:$0xff] %v818_v37  ;;  %v891_v4 = vmul.f32 0.5, %v818_v37  ;;  %v937_v40 = vld [vmem:[#allocation10 + $0x38] sm:$0xff] }
 0x43d   :  { %v965_v7 = vadd.f32 %v949_v0, %v1894_v5 }
 0x43e   :  { %v967_v8 = vadd.f32 %v951_v2, %v1897_v6  ;;  %1451 = vpow2.f32 %v914_v3  ;;  %v916_v10 = vmul.f32 1.442695, %v891_v4  ;;  %v821_v11 = vpop.f32.mrb[28].mxu1 }
 0x43f   :  { %v1174_v12 = vpack.c.bf16 %v965_v7, %v964_v63  ;;  %v1930_v39 = vadd.f32 %v821_v11, %v1869_v23  ;;  %v823_v41 = vpop.f32.mrb[29].mxu1 }
 0x440   :  { %v1448_v42 = vpop.eup %1447  ;;  %v1179_v43 = vpack.c.bf16 %v967_v8, %v966_v1  ;;  %1453 = vpow2.f32 %v916_v10  ;;  %v824_v44 = vadd.f32 %v823_v41, %v1871_v24  ;;  %v825_v45 = vpop.f32.mrb[30].mxu1 }
 0x441   :  { %1206 = vst [vmem:[#allocation11 + $0x8] sm:$0xff] %v1174_v12   ;;  %v952_v5 = vmul.f32 %v1448_v42, %v936_v9  ;;  %870 = vst [vmem:[#allocation12 + $0xa0] sm:$0xff] %v1930_v39  ;;  %v1935_v6 = vadd.f32 %v825_v45, %v1869_v23  ;;  %v827_v46 = vpop.f32.mrb[31].mxu1 }
 0x442   :  { %v1450_v48 = vpop.eup %1449  ;;  %1207 = vst [vmem:[#allocation11 + $0x10] sm:$0xff] %v1179_v43   ;;  %871 = vst [vmem:[#allocation12 + $0xa8] sm:$0xff] %v824_v44  ;;  %v892_v49 = vmul.f32 0.5, %v824_v44  ;;  %v828_v47 = vadd.f32 %v827_v46, %v1871_v24 }
 0x443   :  { %v968_v51 = vadd.f32 %v952_v5, %v1904_v50  ;;  %v953_v52 = vmul.f32 %v1450_v48, %v937_v40  ;;  %872 = vst [vmem:[#allocation12 + $0xb0] sm:$0xff] %v1935_v6 }
 0x444   :  { %v918_v53 = vmul.f32 1.442695, %v892_v49  ;;  %873 = vst [vmem:[#allocation12 + $0xb8] sm:$0xff] %v828_v47  ;;  %v893_v54 = vmul.f32 0.5, %v828_v47 }
 0x445   :  { %v969_v55 = vadd.f32 %v953_v52, %v1909_v56 }
 0x446   :  { %1455 = vpow2.f32 %v918_v53  ;;  %v920_v58 = vmul.f32 1.442695, %v893_v54  ;;  %v831_v59 = vpop.f32.mrb[32].mxu1 }
 0x447   :  { %v1184_v60 = vpack.c.bf16 %v969_v55, %v968_v51  ;;  %v1942_v61 = vadd.f32 %v831_v59, %v1869_v23  ;;  %v833_v62 = vpop.f32.mrb[33].mxu1 }
 0x448   :  { %v1452_v13 = vpop.eup %1451  ;;  %1457 = vpow2.f32 %v920_v58  ;;  %v834_v50 = vadd.f32 %v833_v62, %v1871_v24  ;;  %v835_v15 = vpop.f32.mrb[34].mxu1 }
 0x449   :  { %1208 = vst [vmem:[#allocation11 + $0x18] sm:$0xff] %v1184_v60   ;;  %v954_v16 = vmul.f32 %v1452_v13, %v938_v57  ;;  %874 = vst [vmem:[#allocation12 + $0xc0] sm:$0xff] %v1942_v61  ;;  %v1947_v56 = vadd.f32 %v835_v15, %v1869_v23  ;;  %v837_v17 = vpop.f32.mrb[35].mxu1 }
 0x44a   :  { %v1454_v18 = vpop.eup %1453  ;;  %875 = vst [vmem:[#allocation12 + $0xc8] sm:$0xff] %v834_v50  ;;  %v894_v19 = vmul.f32 0.5, %v834_v50  ;;  %v838_v20 = vadd.f32 %v837_v17, %v1871_v24 }
 0x44b   :  { %v970_v22 = vadd.f32 %v954_v16, %v1916_v21  ;;  %v955_v25 = vmul.f32 %v1454_v18, %v939_v14  ;;  %876 = vst [vmem:[#allocation12 + $0xd0] sm:$0xff] %v1947_v56  ;;  %v941_v21 = vld [vmem:[#allocation10 + $0x58] sm:$0xff] }
 0x44c   :  { %v922_v26 = vmul.f32 1.442695, %v894_v19  ;;  %877 = vst [vmem:[#allocation12 + $0xd8] sm:$0xff] %v838_v20  ;;  %v895_v27 = vmul.f32 0.5, %v838_v20 }
 0x44d   :  { %v971_v28 = vadd.f32 %v955_v25, %v1921_v32 }
 0x44e   :  { %1459 = vpow2.f32 %v922_v26  ;;  %v924_v31 = vmul.f32 1.442695, %v895_v27  ;;  %v841_v30 = vpop.f32.mrb[36].mxu1 }
 0x44f   :  { %v1189_v33 = vpack.c.bf16 %v971_v28, %v970_v22  ;;  %v842_v34 = vadd.f32 %v841_v30, %v1869_v23  ;;  %v843_v35 = vpop.f32.mrb[37].mxu1 }
 0x450   :  { %v1456_v36 = vpop.eup %1455  ;;  %1461 = vpow2.f32 %v924_v31  ;;  %v844_v37 = vadd.f32 %v843_v35, %v1871_v24  ;;  %v845_v38 = vpop.f32.mrb[38].mxu1 }
 0x451   :  { %1209 = vst [vmem:[#allocation11 + $0x20] sm:$0xff] %v1189_v33   ;;  %v956_v63 = vmul.f32 %v1456_v36, %v940_v29  ;;  %878 = vst [vmem:[#allocation12 + $0xe0] sm:$0xff] %v842_v34  ;;  %v846_v32 = vadd.f32 %v845_v38, %v1869_v23  ;;  %v847_v0 = vpop.f32.mrb[39].mxu1 }
 0x452   :  { %v1458_v1 = vpop.eup %1457  ;;  %879 = vst [vmem:[#allocation12 + $0xe8] sm:$0xff] %v844_v37  ;;  %v896_v2 = vmul.f32 0.5, %v844_v37  ;;  %v848_v3 = vadd.f32 %v847_v0, %v1871_v24 }
 0x453   :  { %v972_v4 = vadd.f32 %v956_v63, %v1930_v39  ;;  %v957_v7 = vmul.f32 %v1458_v1, %v941_v21  ;;  %880 = vst [vmem:[#allocation12 + $0xf0] sm:$0xff] %v846_v32 }
 0x454   :  { %v926_v8 = vmul.f32 1.442695, %v896_v2  ;;  %881 = vst [vmem:[#allocation12 + $0xf8] sm:$0xff] %v848_v3  ;;  %v897_v9 = vmul.f32 0.5, %v848_v3 }
 0x455   :  { %v973_v23 = vadd.f32 %v957_v7, %v1935_v6 }
 0x456   :  { %1588 = shalt.err (!%p1585_p2)
}
 0x457   :  { %s1589_s9 = scalar_lea.hbm %s2003_s8, 4096 }
 0x458   :  { %p1590_p3 = scmp.ne.s32.totalorder %s2003_s8, %s1589_s9  ;;  %p1593_p4 = scmp.lt.u32.totalorder %s1589_s9, %s2003_s8 }
 0x45a   :  { %p1595_p5 = pnand %p1593_p4, %p1590_p3 }
 0x45c   :  { %1598 = shalt.err (!%p1595_p5)
}
 0x45d   :  { %s1642_s12 = smov 256   ;;  %s1643_s15 = smov 16   ;;  %v942_v24 = vld [vmem:[#allocation10 + $0x60] sm:$0xff]  ;;  %1463 = vpow2.f32 %v926_v8  ;;  %v928_v10 = vmul.f32 1.442695, %v897_v9  ;;  %v1194_v11 = vpack.c.bf16 %v973_v23, %v972_v4  ;;  %v1460_v12 = vpop.eup %1459  ;;  %v943_v39 = vld [vmem:[#allocation10 + $0x68] sm:$0xff] }
 0x45e   :  { %1081 = dma.vmem_to_hbm [thread:$0]  %s1956_s25, 4096, %s2003_s8, [#allocation13], %s1642_s12, %s1642_s12, %s1643_s15   ;;  %v958_v41 = vmul.f32 %v1460_v12, %v942_v24  ;;  %v1462_v42 = vpop.eup %1461  ;;  %v944_v45 = vld [vmem:[#allocation10 + $0x70] sm:$0xff]  ;;  %v945_v46 = vld [vmem:[#allocation10 + $0x78] sm:$0xff] }
 0x45f   :  { %1465 = vpow2.f32 %v928_v10  ;;  %1210 = vst [vmem:[#allocation11 + $0x28] sm:$0xff] %v1194_v11   ;;  %v959_v40 = vmul.f32 %v1462_v42, %v943_v39  ;;  %s1644_s8 = smov [#allocation11]  }
 0x460   :  { %v974_v43 = vadd.f32 %v958_v41, %v1942_v61  ;;  %s1063_s20 = sshll.u32 %s1644_s8, 4  ;;  %s1064_s20 = int_to_ptr.vmem [resolvable:$true] %s1063_s20 }
 0x461   :  { %v975_v44 = vadd.f32 %v959_v40, %v1947_v56  ;;  %s1599_s21 = scalar_lea.vmem %s1064_s20, 1024  ;;  %p1604_p7 = scmp.lt.s32.totalorder %s1064_s20, %s1064_s20 }
 0x462   :  { %p1600_p6 = scmp.ne.s32.totalorder %s1064_s20, %s1599_s21  ;;  %p1605_p8 = scmp.lt.s32.totalorder %s1599_s21, %s1599_s21 }
 0x463   :  { %v1199_v5 = vpack.c.bf16 %v975_v44, %v974_v43 }
 0x464   :  { %p1606_p9 = por %p1605_p8, %p1604_p7 }
 0x465   :  { %1211 = vst [vmem:[#allocation11 + $0x30] sm:$0xff] %v1199_v5  }
 0x466   :  { %p1607_p10 = pnand %p1606_p9, %p1600_p6 }
 0x467   :  { %v1464_v6 = vpop.eup %1463 }
 0x468   :  { %v960_v48 = vmul.f32 %v1464_v6, %v944_v45 }
 0x469   :  { %v1466_v49 = vpop.eup %1465 }
 0x46a   :  { %v976_v47 = vadd.f32 %v960_v48, %v842_v34  ;;  %v961_v51 = vmul.f32 %v1466_v49, %v945_v46 }
 0x46c   :  { %v977_v52 = vadd.f32 %v961_v51, %v846_v32 }
 0x46e   :  { %v1204_v53 = vpack.c.bf16 %v977_v52, %v976_v47 }
 0x470   :  { %1212 = vst [vmem:[#allocation11 + $0x38] sm:$0xff] %v1204_v53  }
 0x471   :  { %1610 = shalt.err (!%p1607_p10)
}
 0x472   :  { %s1611_s4 = scalar_lea.hbm %s2002_s7, 1024 }
 0x473   :  { %p1612_p11 = scmp.ne.s32.totalorder %s2002_s7, %s1611_s4  ;;  %p1615_p12 = scmp.lt.u32.totalorder %s1611_s4, %s2002_s7 }
 0x475   :  { %p1617_p13 = pnand %p1615_p12, %p1612_p11 }
 0x477   :  { %1620 = shalt.err (!%p1617_p13)
}
 0x478   :  { %1069 = dma.vmem_to_hbm [thread:$0]  %s1064_s20, 1024, %s2002_s7, [#allocation4], %s1633_s17, %s1633_s17, %s1634_s18  }
 0x479   :  { %1627 = dma.done.wait [#allocation4], 1024  }
 0x47a   :  { %1628 = vsyncadd [#allocation4], 4294966272 }
 0x47b   :  { %1629 = dma.done.wait [#allocation13], 4096  }
 0x47c   :  { %1630 = vsyncadd [#allocation13], 4294963200 }
 0x47d   :  { %1088 = vsyncpa [#allocation3], 1 }
 0x47e   :  { %1089 = vsyncpa [#allocation6], 1 }
 0x47f   :  { %1090 = vsyncpa [#allocation9], 1 }
 0x480   :  { %1091 = vsyncpa [#allocation4], 1 }
 0x481   :  { %1092 = vsyncpa [#allocation13], 1 }

</bundles_post_ra>
